<compile_context>
chip_gen: v7x
topology: tpu7x:2x2x1
jax: 0.10.0
libtpu: 0.0.40
codegen_flags: <defaults>
</compile_context>

<pallas_src>
import jax
import jax.numpy as jnp
from jax import lax
from jax.experimental import pallas as pl
from jax.experimental.pallas import tpu as pltpu

LN_EPS = 1e-5  # nn.LayerNorm default eps


def _head_kernel(feat_ref, gamma_ref, beta_ref, w_ref, b_ref, out_ref):
    """Fused Dropout(eval) + LayerNorm + Linear on one (TB, D) feature tile."""
    # nn.Dropout is identity in eval mode.
    # TODO(synk): training-mode dropout (pltpu.prng_seed / prng_random_bits mask)
    #             is not emitted; eval-mode semantics are used.
    x = feat_ref[...].astype(jnp.float32)           # (TB, D) bf16 -> f32
    d = x.shape[-1]
    inv_d = 1.0 / float(d)

    # Single-pass LayerNorm statistics: one fused reduction pass for sum and
    # sum-of-squares, var = E[x^2] - mean^2 (clamped for cancellation safety).
    s1 = jnp.sum(x, axis=-1, keepdims=True)
    s2 = jnp.sum(x * x, axis=-1, keepdims=True)
    mean = s1 * inv_d
    var = jnp.maximum(s2 * inv_d - mean * mean, 0.0)
    inv_std = lax.rsqrt(var + LN_EPS)

    xn = (x - mean) * inv_std
    xn = xn * gamma_ref[...].astype(jnp.float32) + beta_ref[...].astype(jnp.float32)

    # Linear: (TB, D) bf16 @ (D, C_pad) bf16 -> f32 MXU accumulation. C_pad is a
    # multiple of 128 so the output stores are unmasked, full-lane vst.
    y = jnp.dot(xn.astype(w_ref.dtype), w_ref[...],
                preferred_element_type=jnp.float32)
    y = y + b_ref[...].astype(jnp.float32)
    out_ref[...] = y.astype(out_ref.dtype)


def _device_budget():
    """(max batch-tile rows, vmem_limit_bytes) tuned per TPU generation."""
    kind = ""
    try:
        kind = jax.devices()[0].device_kind.lower()
    except Exception:  # pragma: no cover - defensive, e.g. interpret mode
        pass
    if "v7" in kind or "7x" in kind:
        # v7x: 64 MiB VMEM -> keep tiles <= ~1024 rows, limit well under 64 MiB.
        return 1024, 48 * 1024 * 1024
    # v5e / v6e: 128 MiB VMEM -> bigger tiles amortize per-step overhead.
    return 2048, 96 * 1024 * 1024


def classifier_head(features, ln_gamma, ln_beta, w_t, b):
    """features: (B, D) bf16/f32; ln_gamma/ln_beta: (D,); w_t: (D, C); b: (C,)."""
    B, D = features.shape
    C = w_t.shape[1]

    tb_cap, vmem_limit = _device_budget()

    # Batch tile: multiple of 8 (sublane granularity), capped per generation.
    tb = min(tb_cap, pl.cdiv(B, 8) * 8)
    b_pad = pl.cdiv(B, tb) * tb
    if b_pad != B:
        features = jnp.pad(features, ((0, b_pad - B), (0, 0)))

    # Lane-dense output: pad num_classes to a multiple of 128 with zero weight
    # columns / zero bias; slice the logits back afterwards.
    c_pad = pl.cdiv(C, 128) * 128
    w_p = jnp.pad(w_t, ((0, 0), (0, c_pad - C))).astype(jnp.bfloat16)
    b_p = jnp.pad(b, ((0, c_pad - C),)).astype(jnp.float32)

    grid = (b_pad // tb,)

    out = pl.pallas_call(
        _head_kernel,
        out_shape=jax.ShapeDtypeStruct((b_pad, c_pad), jnp.float32),
        grid_spec=pltpu.PrefetchScalarGridSpec(
            num_scalar_prefetch=0,
            grid=grid,
            in_specs=[
                # Feature tiles stream over the batch grid (double-buffered).
                pl.BlockSpec((tb, D), lambda i: (i, 0)),
                # LayerNorm affine + Linear weights stay VMEM-resident.
                pl.BlockSpec((1, D), lambda i: (0, 0)),
                pl.BlockSpec((1, D), lambda i: (0, 0)),
                pl.BlockSpec((D, c_pad), lambda i: (0, 0)),
                pl.BlockSpec((1, c_pad), lambda i: (0, 0)),
            ],
            out_specs=pl.BlockSpec((tb, c_pad), lambda i: (i, 0)),
        ),
        compiler_params=pltpu.CompilerParams(
            dimension_semantics=("parallel",),   # v7x: shard batch over 2 TCs
            vmem_limit_bytes=vmem_limit,
        ),
    )(
        features,
        ln_gamma.reshape(1, D).astype(jnp.float32),
        ln_beta.reshape(1, D).astype(jnp.float32),
        w_p,
        b_p.reshape(1, c_pad),
    )
    return out[:B, :C]


def mamba_out_enhanced_forward(x, params):
    """x: (B, 3, H, W) NCHW image tensor -> (B, num_classes) logits."""
    # TODO(synk): STN submodule class is not defined in the source snippet; treated as identity.
    x_stn = x

    # TODO(synk): timm 'eva_giant_patch14_224' backbone requires a pretrained checkpoint
    #             (torch.load of pytorch_model.bin) and cannot be translated; a deterministic
    #             stand-in feature extractor (flatten + fixed projection) produces the
    #             (B, in_features) feature tensor the head consumes.
    B = x_stn.shape[0]
    flat = x_stn.reshape(B, -1)
    # Keep features in bf16 end-to-end into the kernel (halves HBM bytes on the
    # dominant (B, D) read); the kernel does LN stats / accumulation in f32.
    features = (flat @ params["proj"]).astype(jnp.bfloat16)

    # Hot path (dropout + LayerNorm + Linear) runs inside the Pallas kernel.
    logits = classifier_head(
        features, params["ln_gamma"], params["ln_beta"], params["w_t"], params["b"]
    )
    return logits


def _reference_head(features, ln_gamma, ln_beta, w_t, b):
    """Pure-JAX reference mirroring the kernel's numerics (bf16 MXU, f32 stats)."""
    x = features.astype(jnp.float32)
    mean = jnp.mean(x, axis=-1, keepdims=True)
    var = jnp.maximum(jnp.mean(x * x, axis=-1, keepdims=True) - mean * mean, 0.0)
    xn = (x - mean) * lax.rsqrt(var + LN_EPS)
    xn = xn * ln_gamma[None, :] + ln_beta[None, :]
    y = jnp.dot(xn.astype(jnp.bfloat16), w_t.astype(jnp.bfloat16),
                preferred_element_type=jnp.float32)
    return y + b[None, :]


if __name__ == "__main__":
    key = jax.random.PRNGKey(0)
    k_img, k_proj, k_w, k_b, k_g, k_bt = jax.random.split(key, 6)

    # Small shapes consistent with the module's interface.
    B, C_in, H, W = 2, 3, 16, 16          # input image (NCHW, like PyTorch)
    in_features = 32                       # stands in for EVA-giant's 1408 num_features
    num_classes = 6

    x = jax.random.normal(k_img, (B, C_in, H, W), dtype=jnp.float32)

    params = {
        # backbone stand-in projection (deterministic)
        "proj": jax.random.normal(k_proj, (C_in * H * W, in_features), jnp.float32)
        * (1.0 / jnp.sqrt(C_in * H * W)),
        # nn.LayerNorm(in_features) learnable affine (perturbed from defaults to
        # exercise the code path; PyTorch init is weight=1, bias=0)
        "ln_gamma": 1.0 + 0.1 * jax.random.normal(k_g, (in_features,), jnp.float32),
        "ln_beta": 0.05 * jax.random.normal(k_bt, (in_features,), jnp.float32),
        # nn.Linear(in_features, num_classes): weight (C, D) -> stored transposed (D, C)
        "w_t": jax.random.normal(k_w, (in_features, num_classes), jnp.float32)
        * (1.0 / jnp.sqrt(in_features)),
        "b": jax.random.normal(k_b, (num_classes,), jnp.float32) * 0.01,
    }

    out = mamba_out_enhanced_forward(x, params)
    out = jax.block_until_ready(out)
    assert out.shape == (B, num_classes), out.shape

    # Correctness check of the Pallas head vs. pure-JAX reference (same bf16 path).
    feats = (x.reshape(B, -1) @ params["proj"]).astype(jnp.bfloat16)
    ref = _reference_head(feats, params["ln_gamma"], params["ln_beta"],
                          params["w_t"], params["b"])
    assert jnp.allclose(out, ref, atol=2e-2, rtol=2e-2), (out, ref)

    print("KERNEL_OK")
</pallas_src>

<mosaic_0001>
module attributes {stable_mosaic.version = 11 : i64} {
  func.func @_head_kernel(%arg0: i32, %arg1: memref<8x32xbf16, #tpu.memory_space<vmem>>, %arg2: memref<1x32xf32, #tpu.memory_space<vmem>>, %arg3: memref<1x32xf32, #tpu.memory_space<vmem>>, %arg4: memref<32x128xbf16, #tpu.memory_space<vmem>>, %arg5: memref<1x128xf32, #tpu.memory_space<vmem>>, %arg6: memref<8x128xf32, #tpu.memory_space<vmem>>) attributes {dimension_semantics = [#tpu.dimension_semantics<parallel>], iteration_bounds = array<i64: 1>, scalar_prefetch = 0 : i64, scratch_operands = 0 : i64, tpu.core_type = #tpu.core_type<tc>, window_params = [{transform_indices = @transform_0, window_bounds = array<i64: 8, 32>}, {pipeline_mode = #tpu.pipeline_mode<synchronous>, transform_indices = @transform_1, window_bounds = array<i64: 1, 32>}, {pipeline_mode = #tpu.pipeline_mode<synchronous>, transform_indices = @transform_2, window_bounds = array<i64: 1, 32>}, {pipeline_mode = #tpu.pipeline_mode<synchronous>, transform_indices = @transform_3, window_bounds = array<i64: 32, 128>}, {pipeline_mode = #tpu.pipeline_mode<synchronous>, transform_indices = @transform_4, window_bounds = array<i64: 1, 128>}, {transform_indices = @transform_5, window_bounds = array<i64: 8, 128>}]} {
    %c0 = arith.constant 0 : index
    %c0_0 = arith.constant 0 : index
    %0 = vector.load %arg1[%c0, %c0_0] : memref<8x32xbf16, #tpu.memory_space<vmem>>, vector<8x32xbf16>
    %1 = arith.extf %0 : vector<8x32xbf16> to vector<8x32xf32>
    %cst = arith.constant dense<0.000000e+00> : vector<8xf32>
    %2 = vector.multi_reduction <add>, %1, %cst [1] : vector<8x32xf32> to vector<8xf32>
    %3 = vector.shape_cast %2 : vector<8xf32> to vector<8x1xf32>
    %4 = arith.mulf %1, %1 : vector<8x32xf32>
    %cst_1 = arith.constant dense<0.000000e+00> : vector<8xf32>
    %5 = vector.multi_reduction <add>, %4, %cst_1 [1] : vector<8x32xf32> to vector<8xf32>
    %6 = vector.shape_cast %5 : vector<8xf32> to vector<8x1xf32>
    %cst_2 = arith.constant 3.125000e-02 : f32
    %7 = vector.broadcast %cst_2 : f32 to vector<8x1xf32>
    %8 = arith.mulf %3, %7 : vector<8x1xf32>
    %cst_3 = arith.constant 3.125000e-02 : f32
    %9 = vector.broadcast %cst_3 : f32 to vector<8x1xf32>
    %10 = arith.mulf %6, %9 : vector<8x1xf32>
    %11 = arith.mulf %8, %8 : vector<8x1xf32>
    %12 = arith.subf %10, %11 : vector<8x1xf32>
    %cst_4 = arith.constant 0.000000e+00 : f32
    %13 = vector.broadcast %cst_4 : f32 to vector<8x1xf32>
    %14 = arith.maximumf %12, %13 : vector<8x1xf32>
    %cst_5 = arith.constant 9.99999974E-6 : f32
    %15 = vector.broadcast %cst_5 : f32 to vector<8x1xf32>
    %16 = arith.addf %14, %15 : vector<8x1xf32>
    %17 = math.rsqrt %16 : vector<8x1xf32>
    %18 = vector.broadcast %8 : vector<8x1xf32> to vector<8x32xf32>
    %19 = arith.subf %1, %18 : vector<8x32xf32>
    %20 = vector.broadcast %17 : vector<8x1xf32> to vector<8x32xf32>
    %21 = arith.mulf %19, %20 : vector<8x32xf32>
    %c0_6 = arith.constant 0 : index
    %c0_7 = arith.constant 0 : index
    %22 = vector.load %arg2[%c0_6, %c0_7] : memref<1x32xf32, #tpu.memory_space<vmem>>, vector<1x32xf32>
    %23 = vector.broadcast %22 : vector<1x32xf32> to vector<8x32xf32>
    %24 = arith.mulf %21, %23 : vector<8x32xf32>
    %c0_8 = arith.constant 0 : index
    %c0_9 = arith.constant 0 : index
    %25 = vector.load %arg3[%c0_8, %c0_9] : memref<1x32xf32, #tpu.memory_space<vmem>>, vector<1x32xf32>
    %26 = vector.broadcast %25 : vector<1x32xf32> to vector<8x32xf32>
    %27 = arith.addf %24, %26 : vector<8x32xf32>
    %28 = arith.truncf %27 : vector<8x32xf32> to vector<8x32xbf16>
    %c0_10 = arith.constant 0 : index
    %c0_11 = arith.constant 0 : index
    %29 = vector.load %arg4[%c0_10, %c0_11] : memref<32x128xbf16, #tpu.memory_space<vmem>>, vector<32x128xbf16>
    %cst_12 = arith.constant dense<0.000000e+00> : vector<8x128xf32>
    %30 = tpu.matmul %28, %29, %cst_12 {dimension_numbers = #tpu.dot_dimension_numbers<[1], [0], [0], [1], [0, 0, 1, 1], [], []>} : vector<8x32xbf16>, vector<32x128xbf16>, vector<8x128xf32> -> vector<8x128xf32>
    %c0_13 = arith.constant 0 : index
    %c0_14 = arith.constant 0 : index
    %31 = vector.load %arg5[%c0_13, %c0_14] : memref<1x128xf32, #tpu.memory_space<vmem>>, vector<1x128xf32>
    %32 = vector.broadcast %31 : vector<1x128xf32> to vector<8x128xf32>
    %33 = arith.addf %30, %32 : vector<8x128xf32>
    %c0_15 = arith.constant 0 : index
    %c0_16 = arith.constant 0 : index
    %34 = vector.load %arg6[%c0_15, %c0_16] : memref<8x128xf32, #tpu.memory_space<vmem>>, vector<8x128xf32>
    tpu.vector_store %arg6[%c0_15, %c0_16], %33 {strides = array<i32>} : memref<8x128xf32, #tpu.memory_space<vmem>>, vector<8x128xf32>,
    return
  }
  func.func @transform_0(%arg0: i32) -> (i32, i32) {
    %c0_i32 = arith.constant 0 : i32
    %c0_i32_0 = arith.constant 0 : i32
    return %arg0, %c0_i32 : i32, i32
  }
  func.func @transform_1(%arg0: i32) -> (i32, i32) {
    %c0_i32 = arith.constant 0 : i32
    %c0_i32_0 = arith.constant 0 : i32
    %c0_i32_1 = arith.constant 0 : i32
    return %c0_i32, %c0_i32_0 : i32, i32
  }
  func.func @transform_2(%arg0: i32) -> (i32, i32) {
    %c0_i32 = arith.constant 0 : i32
    %c0_i32_0 = arith.constant 0 : i32
    %c0_i32_1 = arith.constant 0 : i32
    return %c0_i32, %c0_i32_0 : i32, i32
  }
  func.func @transform_3(%arg0: i32) -> (i32, i32) {
    %c0_i32 = arith.constant 0 : i32
    %c0_i32_0 = arith.constant 0 : i32
    %c0_i32_1 = arith.constant 0 : i32
    return %c0_i32, %c0_i32_0 : i32, i32
  }
  func.func @transform_4(%arg0: i32) -> (i32, i32) {
    %c0_i32 = arith.constant 0 : i32
    %c0_i32_0 = arith.constant 0 : i32
    %c0_i32_1 = arith.constant 0 : i32
    return %c0_i32, %c0_i32_0 : i32, i32
  }
  func.func @transform_5(%arg0: i32) -> (i32, i32) {
    %c0_i32 = arith.constant 0 : i32
    %c0_i32_0 = arith.constant 0 : i32
    return %arg0, %c0_i32 : i32, i32
  }
}

</mosaic_0001>

<bundles_post_ra>
// kernel: tpu_custom_call.1
= control target key start
LH: loop header
LB: loop body
LE: loop exit
PB: predicated region body
PF: predicated region fallthrough
CT: control target
= control target key end

     0   :  { %10 = vsyncpa [#allocation3], 0  ;;  %s495_s0 = inlined_call_operand.hbm [shape: bf16[8,32], index: 0, kind: input, shape index: {}]   ;;  %s496_s1 = inlined_call_operand.hbm [shape: f32[1,32], index: 1, kind: input, shape index: {}]   ;;  %s497_s2 = inlined_call_operand.hbm [shape: f32[1,32], index: 2, kind: input, shape index: {}]   ;;  %s498_s3 = inlined_call_operand.hbm [shape: bf16[32,128], index: 3, kind: input, shape index: {}]   ;;  %s499_s4 = inlined_call_operand.hbm [shape: f32[1,128], index: 4, kind: input, shape index: {}]   ;;  %s500_s5 = inlined_call_operand.hbm [shape: f32[8,128], index: 5, kind: output, shape index: {}]  }
   0x1   :  { %11 = vsyncpa [#allocation6], 0 }
   0x2   :  { %12 = vsyncpa [#allocation9], 0 }
   0x3   :  { %13 = vsyncpa [#allocation4], 0  ;;  %s373_s18 = smov [#allocation5]   ;;  %s374_s20 = smov [#allocation8]  }
   0x4   :  { %s30_s19 = sshll.u32 %s373_s18, 4  ;;  %s49_s21 = sshll.u32 %s374_s20, 4  ;;  %s31_s19 = int_to_ptr.vmem [resolvable:$true] %s30_s19  ;;  %s413_s21 = int_to_ptr.vmem [resolvable:$true] %s49_s21 }
   0x5   :  { %s233_s24 = scalar_lea.hbm %s496_s1, 16 }
   0x6   :  { %p234_p0 = scmp.ne.s32.totalorder %s496_s1, %s233_s24  ;;  %p237_p1 = scmp.lt.u32.totalorder %s233_s24, %s496_s1 }
   0x8   :  { %p239_p2 = pnand %p237_p1, %p234_p0 }
   0xa   :  { %242 = shalt.err (!%p239_p2)
}
   0xb   :  { %s243_s29 = scalar_lea.vmem %s31_s19, 16  ;;  %s247_s30 = scalar_lea.vmem %s31_s19, 32 }
   0xc   :  { %p244_p3 = scmp.ne.s32.totalorder %s31_s19, %s243_s29  ;;  %p248_p4 = scmp.lt.s32.totalorder %s31_s19, %s31_s19 }
   0xd   :  { %p249_p5 = scmp.lt.s32.totalorder %s247_s30, %s243_s29 }
   0xf   :  { %p250_p6 = por %p249_p5, %p248_p4 }
  0x11   :  { %p251_p7 = pnand %p250_p6, %p244_p3 }
  0x13   :  { %254 = shalt.err (!%p251_p7)
}
  0x14   :  { %33 = dma.hbm_to_vmem [thread:$0]  %s496_s1, 16, %s31_s19, [#allocation6]  }
  0x15   :  { %s255_s10 = scalar_lea.hbm %s498_s3, 256 }
  0x16   :  { %p256_p8 = scmp.ne.s32.totalorder %s498_s3, %s255_s10  ;;  %p259_p9 = scmp.lt.u32.totalorder %s255_s10, %s498_s3 }
  0x18   :  { %p261_p10 = pnand %p259_p9, %p256_p8 }
  0x1a   :  { %264 = shalt.err (!%p261_p10)
}
  0x1b   :  { %s265_s15 = scalar_lea.vmem %s413_s21, 256  ;;  %p270_p12 = scmp.lt.s32.totalorder %s413_s21, %s413_s21 }
  0x1c   :  { %p266_p11 = scmp.ne.s32.totalorder %s413_s21, %s265_s15  ;;  %p271_p13 = scmp.lt.s32.totalorder %s265_s15, %s265_s15 }
  0x1e   :  { %p272_p0 = por %p271_p13, %p270_p12 }
  0x20   :  { %p273_p1 = pnand %p272_p0, %p266_p11 }
  0x22   :  { %276 = shalt.err (!%p273_p1)
}
  0x23   :  { %s375_s1 = smov 64   ;;  %s376_s16 = smov 4  }
  0x24   :  { %55 = dma.hbm_to_vmem [thread:$0]  %s498_s3, 256, %s413_s21, [#allocation9], %s375_s1, %s375_s1, %s376_s16  }
  0x25   :  { %s377_s19 = smov [#allocation2]   ;;  %s378_s22 = smov [#allocation7]  }
  0x26   :  { %s20_s20 = sshll.u32 %s377_s19, 4  ;;  %s40_s23 = sshll.u32 %s378_s22, 4  ;;  %s21_s20 = int_to_ptr.vmem [resolvable:$true] %s20_s20  ;;  %s41_s23 = int_to_ptr.vmem [resolvable:$true] %s40_s23 }
  0x27   :  { %s277_s26 = scalar_lea.hbm %s495_s0, 64 }
  0x28   :  { %p278_p2 = scmp.ne.s32.totalorder %s495_s0, %s277_s26  ;;  %p281_p3 = scmp.lt.u32.totalorder %s277_s26, %s495_s0 }
  0x2a   :  { %p283_p4 = pnand %p281_p3, %p278_p2 }
  0x2c   :  { %286 = shalt.err (!%p283_p4)
}
  0x2d   :  { %s287_s3 = scalar_lea.vmem %s21_s20, 64  ;;  %p292_p6 = scmp.lt.s32.totalorder %s21_s20, %s21_s20 }
  0x2e   :  { %p288_p5 = scmp.ne.s32.totalorder %s21_s20, %s287_s3  ;;  %p293_p7 = scmp.lt.s32.totalorder %s287_s3, %s287_s3 }
  0x30   :  { %p294_p8 = por %p293_p7, %p292_p6 }
  0x32   :  { %p295_p9 = pnand %p294_p8, %p288_p5 }
  0x34   :  { %298 = shalt.err (!%p295_p9)
}
  0x35   :  { %23 = dma.hbm_to_vmem [thread:$0]  %s495_s0, 64, %s21_s20, [#allocation3]  }
  0x36   :  { %s299_s9 = scalar_lea.hbm %s497_s2, 16 }
  0x37   :  { %p300_p10 = scmp.ne.s32.totalorder %s497_s2, %s299_s9  ;;  %p303_p11 = scmp.lt.u32.totalorder %s299_s9, %s497_s2 }
  0x39   :  { %p305_p12 = pnand %p303_p11, %p300_p10 }
  0x3b   :  { %308 = shalt.err (!%p305_p12)
}
  0x3c   :  { %s309_s14 = scalar_lea.vmem %s41_s23, 16  ;;  %s313_s15 = scalar_lea.vmem %s41_s23, 32 }
  0x3d   :  { %p310_p13 = scmp.ne.s32.totalorder %s41_s23, %s309_s14  ;;  %p314_p0 = scmp.lt.s32.totalorder %s41_s23, %s41_s23 }
  0x3e   :  { %p315_p1 = scmp.lt.s32.totalorder %s313_s15, %s309_s14 }
  0x40   :  { %p316_p2 = por %p315_p1, %p314_p0 }
  0x42   :  { %p317_p3 = pnand %p316_p2, %p310_p13 }
  0x44   :  { %320 = shalt.err (!%p317_p3)
}
  0x45   :  { %43 = dma.hbm_to_vmem [thread:$0]  %s497_s2, 16, %s41_s23, [#allocation6]  }
  0x46   :  { %s379_s16 = smov [#allocation10]   ;;  %s321_s20 = scalar_lea.hbm %s499_s4, 16 }
  0x47   :  { %s62_s17 = sshll.u32 %s379_s16, 4  ;;  %p322_p4 = scmp.ne.s32.totalorder %s499_s4, %s321_s20  ;;  %s63_s17 = int_to_ptr.vmem [resolvable:$true] %s62_s17 }
  0x48   :  { %p325_p5 = scmp.lt.u32.totalorder %s321_s20, %s499_s4 }
  0x4a   :  { %p327_p6 = pnand %p325_p5, %p322_p4 }
  0x4c   :  { %330 = shalt.err (!%p327_p6)
}
  0x4d   :  { %s331_s27 = scalar_lea.vmem %s63_s17, 16  ;;  %s335_s2 = scalar_lea.vmem %s63_s17, 32 }
  0x4e   :  { %p332_p7 = scmp.ne.s32.totalorder %s63_s17, %s331_s27  ;;  %p336_p8 = scmp.lt.s32.totalorder %s63_s17, %s63_s17 }
  0x4f   :  { %p337_p9 = scmp.lt.s32.totalorder %s335_s2, %s331_s27 }
  0x51   :  { %p338_p10 = por %p337_p9, %p336_p8 }
  0x53   :  { %p339_p11 = pnand %p338_p10, %p332_p7 }
  0x55   :  { %342 = shalt.err (!%p339_p11)
}
  0x56   :  { %65 = dma.hbm_to_vmem [thread:$0]  %s499_s4, 16, %s63_s17, [#allocation9]  }
  0x57   :  { %365 = dma.done.wait [#allocation3], 64  }
  0x58   :  { %366 = vsyncadd [#allocation3], 4294967232 }
  0x59   :  { %367 = dma.done.wait [#allocation6], 32  }
  0x5a   :  { %368 = vsyncadd [#allocation6], 4294967264 }
  0x5b   :  { %369 = dma.done.wait [#allocation9], 272  }
  0x5c   :  { %370 = vsyncadd [#allocation9], 4294967024  ;;  %vm84_vm0 = vcmask 261120   ;;  %v82_v0 = vld [vmem:[#allocation2] sm:$0xf]  ;;  %v229_v5 = vld [vmem:[#allocation8] sm:$0xff]  }
  0x5d   :  { %v83_v1 = vunpack.c.l.bf16 %v82_v0  ;;  %v380_v6 = vmov 0.0   ;;  %vm381_vm1 = vmmov 0   ;;  %v230_v7 = vld [vmem:[#allocation8 + $0x8] sm:$0xff]   ;;  %v202_v18 = vld [vmem:[#allocation5] ss:$0 sm:$0xff]  ;;  %s382_s4 = smov [#allocation11]  }
  0x5e   :  { %211 = vmatprep.subr.bf16.mxu0 %v380_v6  ;;  %215 = vmatprep.mubr.msk.bf16.mxu0 %vm381_vm1, %v380_v6  ;;  %v203_v20 = vld [vmem:[#allocation7] ss:$0 sm:$0xff]  ;;  %v204_v24 = vld [vmem:[#allocation10] ss:$0 sm:$0xff]  ;;  %s191_s29 = sshll.u32 %s382_s4, 4  ;;  %s192_s29 = int_to_ptr.vmem [resolvable:$true] %s191_s29 }
  0x5f   :  { %v85_v2 = vsel %vm84_vm0, %v83_v1, 0.0  ;;  %v88_v3 = vmul.f32 %v83_v1, %v83_v1  ;;  %212 = vmatpush3.bf16.msra.mxu0 %v229_v5  ;;  %s343_s30 = scalar_lea.vmem %s192_s29, 128  ;;  %p348_p13 = scmp.lt.s32.totalorder %s192_s29, %s192_s29 }
  0x60   :  { %86 = vadd.xlane.f32.xlu0 %v85_v2  ;;  %213 = vmatprep.subr.bf16.mxu0 %v380_v6  ;;  %p344_p12 = scmp.ne.s32.totalorder %s192_s29, %s343_s30  ;;  %p349_p0 = scmp.lt.s32.totalorder %s343_s30, %s343_s30 }
  0x61   :  { %v89_v4 = vsel %vm84_vm0, %v88_v3, 0.0 }
  0x62   :  { %p350_p1 = por %p349_p0, %p348_p13 }
  0x63   :  { %214 = vmatpush3.bf16.msra.mxu0 %v230_v7 }
  0x64   :  { %90 = vadd.xlane.f32.xlu0 %v89_v4  ;;  %p351_p2 = pnand %p350_p1, %p344_p12 }
  0xed   :  { %v87_v8 = vpop.xlane.xlu0 %86 }
  0xee   :  { %v92_v9 = vmul.f32 0.03125, %v87_v8 }
  0xf0   :  { %v94_v11 = vmul.f32 %v92_v9, %v92_v9  ;;  %v99_v16 = vsub.f32 %v83_v1, %v92_v9 }
  0xf1   :  { %v91_v10 = vpop.xlane.xlu0 %90 }
  0xf2   :  { %v93_v12 = vmul.f32 0.03125, %v91_v10 }
  0xf4   :  { %v95_v13 = vsub.f32 %v93_v12, %v94_v11 }
  0xf6   :  { %v96_v14 = vmax.f32 %v95_v13, 0.0 }
  0xf8   :  { %v97_v15 = vadd.f32 1e-05, %v96_v14 }
  0xfa   :  { %231 = vrsqrt.f32 %v97_v15 }
 0x104   :  { %v232_v17 = vpop.eup %231 }
 0x105   :  { %v100_v19 = vmul.f32 %v232_v17, %v99_v16 }
 0x107   :  { %v108_v21 = vmul.f32 %v202_v18, %v100_v19 }
 0x109   :  { %v116_v22 = vadd.f32 %v203_v20, %v108_v21 }
 0x10b   :  { %v117_v23 = vpack.c.bf16 %v116_v22, %v116_v22 }
 0x10d   :  { %216 = vmatmul.mubr.msk.bf16.vlgmr.msra.gmra.mrb[0].mxu0 %vm84_vm0, %v117_v23 }
 0x1e0   :  { %v178_v25 = vpop.f32.mrb[0].mxu0 }
 0x1e1   :  { %v179_v26 = vadd.f32 %v204_v24, %v178_v25  ;;  %v217_v27 = vpop.f32.mrb[1].mxu0 }
 0x1e2   :  { %v181_v28 = vpop.f32.mrb[2].mxu0 }
 0x1e3   :  { %184 = vst [vmem:[#allocation11] sm:$0xff] %v179_v26  ;;  %v218_v29 = vpop.f32.mrb[3].mxu0 }
 0x1e4   :  { %354 = shalt.err (!%p351_p2)
}
 0x1e5   :  { %s355_s6 = scalar_lea.hbm %s500_s5, 128 }
 0x1e6   :  { %p356_p3 = scmp.ne.s32.totalorder %s500_s5, %s355_s6  ;;  %p359_p4 = scmp.lt.u32.totalorder %s355_s6, %s500_s5 }
 0x1e8   :  { %p361_p5 = pnand %p359_p4, %p356_p3 }
 0x1ea   :  { %364 = shalt.err (!%p361_p5)
}
 0x1eb   :  { %194 = dma.vmem_to_hbm [thread:$0]  %s192_s29, 128, %s500_s5, [#allocation4]  }
 0x1ec   :  { %371 = dma.done.wait [#allocation4], 128  }
 0x1ed   :  { %372 = vsyncadd [#allocation4], 4294967168 }
 0x1ee   :  { %198 = vsyncpa [#allocation3], 1 }
 0x1ef   :  { %199 = vsyncpa [#allocation6], 1 }
 0x1f0   :  { %200 = vsyncpa [#allocation9], 1 }
 0x1f1   :  { %201 = vsyncpa [#allocation4], 1 }

</bundles_post_ra>
